<compile_context>
chip_gen: v5e
topology: v5e:2x2
jax: 0.10.0
libtpu: 0.0.40
codegen_flags: <defaults>
</compile_context>

<pallas_src>
import jax
import jax.numpy as jnp
import numpy as np
from jax.experimental import pallas as pl
from jax.experimental.pallas import tpu as pltpu


def _round_up(v, m):
    return (v + m - 1) // m * m


def _cdiv(a, b):
    return (a + b - 1) // b


# ----------------------------------------------------------------------------
# Kernel
# ----------------------------------------------------------------------------
def _attn_pool_head_kernel(x_ref, mask_ref, w_attn_ref, w1t_ref, b1_ref,
                           w2t_ref, b2_ref, out_ref, m_sc, l_sc, acc_sc):
    # x_ref:    (TB, Lc, H)  streamed activations (f32 or bf16)
    # mask_ref: (TB, Lc)     {0, 1} as f32
    # w_attn:   (1, H)       Conv1d(H, 1, 1) weight as a lane-major row (f32)
    # w1t:      (H, H)       Linear(H, H) weight, pre-transposed
    # b1:       (1, H)       f32
    # w2t:      (H, Cpad)    Linear(H, C) weight, pre-transposed + lane-padded
    # b2:       (1, Cpad)    f32
    # out_ref:  (TB, Cpad)   f32, revisited across the L axis, written on last chunk
    # m_sc/l_sc/acc_sc: (TB,1)/(TB,1)/(TB,H) f32 online-softmax state
    lj = pl.program_id(1)

    @pl.when(lj == 0)
    def _():
        m_sc[...] = jnp.full_like(m_sc, -jnp.inf)
        l_sc[...] = jnp.zeros_like(l_sc)
        acc_sc[...] = jnp.zeros_like(acc_sc)

    # Per-chunk upcast only -- the full (TB, L, H) slab is never materialized.
    xc = x_ref[...].astype(jnp.float32)                        # (TB, Lc, H)
    mask = mask_ref[...]                                       # (TB, Lc)

    # Conv1d(H->1, k=1) logits: VPU multiply + lane reduce over H, f32 math.
    # Conv bias dropped: softmax is shift-invariant, so it cannot change out.
    logits = jnp.sum(xc * w_attn_ref[...], axis=-1)            # (TB, Lc)
    logits = jnp.where(mask != 0.0, logits, -jnp.inf)

    # Online-softmax update (f32 state).  Clamp the shift so rows that are
    # fully masked *so far* avoid (-inf) - (-inf) = NaN; rows whose whole mask
    # is zero still end as NaN (0 / 0), matching the PyTorch reference.
    m_prev = m_sc[...]
    m_new = jnp.maximum(m_prev, jnp.max(logits, axis=-1, keepdims=True))
    m_safe = jnp.maximum(m_new, jnp.finfo(jnp.float32).min)
    alpha = jnp.exp(m_prev - m_safe)                           # (TB, 1)
    p = jnp.exp(logits - m_safe)                               # (TB, Lc)

    l_sc[...] = alpha * l_sc[...] + jnp.sum(p, axis=-1, keepdims=True)
    acc_sc[...] = alpha * acc_sc[...] + jnp.sum(p[:, :, None] * xc, axis=1)
    m_sc[...] = m_new

    # Projection head only on the last L chunk: normalize the pooled (TB, H)
    # vector once (instead of TB*L attention divides), then two MXU matmuls
    # with f32 accumulation.
    @pl.when(lj == pl.num_programs(1) - 1)
    def _():
        pooled = acc_sc[...] * pl.reciprocal(l_sc[...], approx=False)   # (TB, H)
        w1t = w1t_ref[...]
        h = jnp.dot(pooled.astype(w1t.dtype), w1t,
                    preferred_element_type=jnp.float32) + b1_ref[...]   # (TB, H)
        h = jnp.maximum(h, 0.0)                                 # ReLU (dropout = id)
        w2t = w2t_ref[...]
        out = jnp.dot(h.astype(w2t.dtype), w2t,
                      preferred_element_type=jnp.float32) + b2_ref[...] # (TB, Cpad)
        out_ref[...] = out.astype(out_ref.dtype)


# ----------------------------------------------------------------------------
# Tile selection (VMEM-budget driven)
# ----------------------------------------------------------------------------
def _stream_bytes(tb, lc, H, Cpad, item):
    x_buf = 2 * tb * lc * H * item         # x chunk, double-buffered
    m_buf = 2 * tb * lc * 4                # mask chunk (f32), double-buffered
    o_buf = 2 * tb * Cpad * 4              # output block, double-buffered
    state = tb * (H + 2) * 4               # online-softmax scratch
    temps = 2 * tb * lc * H * 4            # in-kernel f32 chunk temporaries
    return x_buf + m_buf + o_buf + state + temps


def _choose_tiles(N, L, H, Cpad, item, avail, tb_max=256):
    """Pick (TB batch tile, Lc reduction chunk) fitting `avail` VMEM bytes."""
    tb = min(tb_max, _round_up(N, 8))
    if N > 8 and _cdiv(N, tb) < 2:
        # >= 2 batch blocks so a v7x megacore (2 TCs) never idles one core.
        tb = _round_up(_cdiv(N, 2), 8)

    while True:
        if _stream_bytes(tb, L, H, Cpad, item) <= avail:
            return tb, L                                   # whole L fits; one chunk
        per_tok = 2 * tb * H * item + 2 * tb * 4 + 2 * tb * H * 4
        fixed = 2 * tb * Cpad * 4 + tb * (H + 2) * 4
        lc = ((avail - fixed) // max(per_tok, 1)) // 128 * 128
        if lc >= 128:
            return tb, min(lc, _round_up(L, 128))
        if tb <= 8:
            return 8, 128                                  # pathological H; best effort
        tb = max(8, ((tb // 2) // 8) * 8)


# ----------------------------------------------------------------------------
# Wrapper
# ----------------------------------------------------------------------------
def attention1d_pooling_head(x, input_mask, params, *,
                             compute_dtype=jnp.bfloat16, max_block_batch=256,
                             block_batch=None, block_len=None):
    """x: (N, L, H), input_mask: (N, L) of {0,1}.  Returns (N, num_labels) f32.

    compute_dtype controls the streamed x / W1 / W2 dtype (softmax state and
    accumulation are always f32); bf16 (default) halves HBM traffic.
    block_batch / block_len optionally override the auto-chosen tiles.
    """
    N, L, H = x.shape
    C = params["w2"].shape[0]
    cdt = jnp.dtype(compute_dtype)
    item = cdt.itemsize
    Cpad = max(128, _round_up(C, 128))          # lane-dense output slab

    # --- generation-aware VMEM budget: ~75% of physical capacity ---
    try:
        vmem_cap = int(pltpu.get_tpu_info().vmem_capacity_bytes)
    except Exception:                           # conservative fallback
        vmem_cap = 64 << 20
    vmem_budget = (vmem_cap * 3) // 4           # ~48 MiB v7x, ~96 MiB v5e/v6e

    # constant-index weights are single-buffered (pl.Buffered(1))
    resident = (H * H + H * Cpad) * item + (2 * H + 2 * Cpad) * 4
    avail = max(vmem_budget - resident - (4 << 20), 4 << 20)

    TB, Lc = _choose_tiles(N, L, H, Cpad, item, avail, tb_max=max_block_batch)
    if block_batch is not None:
        TB = max(8, _round_up(int(block_batch), 8))
    if block_len is not None:
        Lc = int(block_len)
        Lc = L if Lc >= L else max(128, (Lc // 128) * 128)  # chunking needs Lc % 128 == 0

    n_b = _cdiv(N, TB)
    Npad = n_b * TB
    Lpad = _round_up(L, Lc)
    n_l = Lpad // Lc

    # --- wrapper-side layout plumbing (padding + pre-transposed weights) ---
    x_p = jnp.pad(x.astype(cdt), ((0, Npad - N), (0, Lpad - L), (0, 0)))
    mask_f = input_mask.astype(jnp.float32)
    # padded L positions -> mask 0 (contribute nothing); padded batch rows ->
    # mask 1 so they never hit the all-masked NaN path (sliced off below).
    mask_p = jnp.pad(mask_f, ((0, 0), (0, Lpad - L)), constant_values=0.0)
    mask_p = jnp.pad(mask_p, ((0, Npad - N), (0, 0)), constant_values=1.0)

    w_attn = params["conv_w"].reshape(1, H).astype(jnp.float32)        # (1, H)
    # params["conv_b"] intentionally unused: softmax shift-invariance no-op.
    w1t = params["w1"].T.astype(cdt)                                   # (H, H)
    b1 = params["b1"].reshape(1, H).astype(jnp.float32)
    w2t = jnp.pad(params["w2"].T.astype(cdt), ((0, 0), (0, Cpad - C))) # (H, Cpad)
    b2 = jnp.pad(params["b2"].astype(jnp.float32),
                 (0, Cpad - C)).reshape(1, Cpad)

    est = resident + _stream_bytes(TB, Lc, H, Cpad, item)
    vmem_limit = int(min(max(32 << 20, est + (4 << 20)), (vmem_cap * 9) // 10))

    const2d = lambda i, j: (0, 0)

    def _const_spec(shape):
        # Constant-index weights: DMA'd once; single-buffer to save VMEM.
        try:
            return pl.BlockSpec(shape, const2d, pipeline_mode=pl.Buffered(1))
        except Exception:
            return pl.BlockSpec(shape, const2d)

    grid_spec = pltpu.PrefetchScalarGridSpec(
        num_scalar_prefetch=0,
        grid=(n_b, n_l),
        in_specs=[
            pl.BlockSpec((TB, Lc, H), lambda i, j: (i, j, 0)),   # x (streamed)
            pl.BlockSpec((TB, Lc), lambda i, j: (i, j)),         # mask (streamed)
            _const_spec((1, H)),                                 # conv weight row
            _const_spec((H, H)),                                 # W1^T (resident)
            _const_spec((1, H)),                                 # b1
            _const_spec((H, Cpad)),                              # W2^T (resident)
            _const_spec((1, Cpad)),                              # b2
        ],
        out_specs=pl.BlockSpec((TB, Cpad), lambda i, j: (i, 0)),
        scratch_shapes=[
            pltpu.VMEM((TB, 1), jnp.float32),    # running max
            pltpu.VMEM((TB, 1), jnp.float32),    # running sum-exp
            pltpu.VMEM((TB, H), jnp.float32),    # running weighted sum
        ],
    )

    out = pl.pallas_call(
        _attn_pool_head_kernel,
        grid_spec=grid_spec,
        out_shape=jax.ShapeDtypeStruct((Npad, Cpad), jnp.float32),
        compiler_params=pltpu.CompilerParams(
            dimension_semantics=("parallel", "arbitrary"),
            vmem_limit_bytes=vmem_limit),
    )(x_p, mask_p, w_attn, w1t, b1, w2t, b2)

    return out[:N, :C]


# ----------------------------------------------------------------------------
# Pure-JAX reference (mirrors the PyTorch forward, eval mode, incl. conv bias)
# ----------------------------------------------------------------------------
def _reference(x, mask, p):
    logits = jnp.einsum("nlh,h->nl", x, p["conv_w"].reshape(-1)) + p["conv_b"][0]
    logits = jnp.where(mask != 0, logits, -jnp.inf)
    attn = jax.nn.softmax(logits, axis=-1)
    pooled = jnp.einsum("nl,nlh->nh", attn, x)
    h = jnp.maximum(pooled @ p["w1"].T + p["b1"], 0.0)   # dropout = identity
    return h @ p["w2"].T + p["b2"]


if __name__ == "__main__":
    key = jax.random.PRNGKey(0)

    def make_params(H, C, k):
        k_cw, k_cb, k_w1, k_b1, k_w2, k_b2 = jax.random.split(k, 6)
        return {
            "conv_w": 0.1 * jax.random.normal(k_cw, (1, H, 1), dtype=jnp.float32),
            "conv_b": 0.1 * jax.random.normal(k_cb, (1,), dtype=jnp.float32),
            "w1": 0.1 * jax.random.normal(k_w1, (H, H), dtype=jnp.float32),
            "b1": 0.1 * jax.random.normal(k_b1, (H,), dtype=jnp.float32),
            "w2": 0.1 * jax.random.normal(k_w2, (C, H), dtype=jnp.float32),
            "b2": 0.1 * jax.random.normal(k_b2, (C,), dtype=jnp.float32),
        }

    # --- test 1: module-scale shapes (batch=2, seq=8, hidden=32, labels=4) ---
    N, L, H, C = 2, 8, 32, 4
    k1, k2, key = jax.random.split(key, 3)
    x = jax.random.normal(k1, (N, L, H), dtype=jnp.float32)
    mask = jnp.ones((N, L), dtype=jnp.float32).at[0, L - 2:].set(0.0)
    params = make_params(H, C, k2)
    ref = _reference(x, mask, params)

    out_f32 = attention1d_pooling_head(x, mask, params, compute_dtype=jnp.float32)
    jax.block_until_ready(out_f32)
    np.testing.assert_allclose(np.asarray(out_f32), np.asarray(ref),
                               rtol=1e-5, atol=1e-5)

    out_bf16 = attention1d_pooling_head(x, mask, params)   # default bf16 streaming
    jax.block_until_ready(out_bf16)
    np.testing.assert_allclose(np.asarray(out_bf16), np.asarray(ref),
                               rtol=5e-2, atol=5e-2)

    # --- test 2: exercise the online-softmax L-chunk reduction (Lc < L) ---
    N2, L2, H2, C2 = 4, 256, 32, 4
    k3, k4, key = jax.random.split(key, 3)
    x2 = jax.random.normal(k3, (N2, L2, H2), dtype=jnp.float32)
    mask2 = jnp.ones((N2, L2), dtype=jnp.float32)
    mask2 = mask2.at[0, 100:].set(0.0)      # ragged sequence length
    mask2 = mask2.at[2, :128].set(0.0)      # whole first chunk masked out
    params2 = make_params(H2, C2, k4)
    ref2 = _reference(x2, mask2, params2)

    out2 = attention1d_pooling_head(x2, mask2, params2, compute_dtype=jnp.float32,
                                    block_len=128)
    jax.block_until_ready(out2)
    np.testing.assert_allclose(np.asarray(out2), np.asarray(ref2),
                               rtol=1e-4, atol=1e-5)

    print("KERNEL_OK")
</pallas_src>

<mosaic_0001>
module attributes {stable_mosaic.version = 11 : i64} {
  func.func @_attn_pool_head_kernel(%arg0: i32, %arg1: i32, %arg2: memref<8x8x32xf32, #tpu.memory_space<vmem>>, %arg3: memref<8x8xf32, #tpu.memory_space<vmem>>, %arg4: memref<1x32xf32, #tpu.memory_space<vmem>>, %arg5: memref<32x32xf32, #tpu.memory_space<vmem>>, %arg6: memref<1x32xf32, #tpu.memory_space<vmem>>, %arg7: memref<32x128xf32, #tpu.memory_space<vmem>>, %arg8: memref<1x128xf32, #tpu.memory_space<vmem>>, %arg9: memref<8x128xf32, #tpu.memory_space<vmem>>, %arg10: memref<8x1xf32, #tpu.memory_space<vmem>>, %arg11: memref<8x1xf32, #tpu.memory_space<vmem>>, %arg12: memref<8x32xf32, #tpu.memory_space<vmem>>) attributes {dimension_semantics = [#tpu.dimension_semantics<parallel>, #tpu.dimension_semantics<arbitrary>], iteration_bounds = array<i64: 1, 1>, scalar_prefetch = 0 : i64, scratch_operands = 3 : i64, tpu.core_type = #tpu.core_type<tc>, window_params = [{transform_indices = @transform_0, window_bounds = array<i64: 8, 8, 32>}, {transform_indices = @transform_1, window_bounds = array<i64: 8, 8>}, {pipeline_mode = #tpu.pipeline_mode<synchronous>, transform_indices = @transform_2, window_bounds = array<i64: 1, 32>}, {pipeline_mode = #tpu.pipeline_mode<synchronous>, transform_indices = @transform_3, window_bounds = array<i64: 32, 32>}, {pipeline_mode = #tpu.pipeline_mode<synchronous>, transform_indices = @transform_4, window_bounds = array<i64: 1, 32>}, {pipeline_mode = #tpu.pipeline_mode<synchronous>, transform_indices = @transform_5, window_bounds = array<i64: 32, 128>}, {pipeline_mode = #tpu.pipeline_mode<synchronous>, transform_indices = @transform_6, window_bounds = array<i64: 1, 128>}, {transform_indices = @transform_7, window_bounds = array<i64: 8, 128>}]} {
    %c0_i32 = arith.constant 0 : i32
    %0 = arith.cmpi eq, %arg1, %c0_i32 : i32
    %1 = arith.extui %0 : i1 to i32
    %c0_i32_0 = arith.constant 0 : i32
    %2 = arith.cmpi ne, %1, %c0_i32_0 : i32
    scf.if %2 {
      %cst_27 = arith.constant 0xFF800000 : f32
      %44 = vector.broadcast %cst_27 : f32 to vector<8x1xf32>
      %c0_28 = arith.constant 0 : index
      %c0_29 = arith.constant 0 : index
      %45 = vector.load %arg10[%c0_28, %c0_29] : memref<8x1xf32, #tpu.memory_space<vmem>>, vector<8x1xf32>
      tpu.vector_store %arg10[%c0_28, %c0_29], %44 {strides = array<i32>} : memref<8x1xf32, #tpu.memory_space<vmem>>, vector<8x1xf32>,
      %cst_30 = arith.constant 0.000000e+00 : f32
      %46 = vector.broadcast %cst_30 : f32 to vector<8x1xf32>
      %c0_31 = arith.constant 0 : index
      %c0_32 = arith.constant 0 : index
      %47 = vector.load %arg11[%c0_31, %c0_32] : memref<8x1xf32, #tpu.memory_space<vmem>>, vector<8x1xf32>
      tpu.vector_store %arg11[%c0_31, %c0_32], %46 {strides = array<i32>} : memref<8x1xf32, #tpu.memory_space<vmem>>, vector<8x1xf32>,
      %cst_33 = arith.constant 0.000000e+00 : f32
      %48 = vector.broadcast %cst_33 : f32 to vector<8x32xf32>
      %c0_34 = arith.constant 0 : index
      %c0_35 = arith.constant 0 : index
      %49 = vector.load %arg12[%c0_34, %c0_35] : memref<8x32xf32, #tpu.memory_space<vmem>>, vector<8x32xf32>
      tpu.vector_store %arg12[%c0_34, %c0_35], %48 {strides = array<i32>} : memref<8x32xf32, #tpu.memory_space<vmem>>, vector<8x32xf32>,
    } else {
    }
    %c0 = arith.constant 0 : index
    %c0_1 = arith.constant 0 : index
    %c0_2 = arith.constant 0 : index
    %3 = vector.load %arg2[%c0, %c0_1, %c0_2] : memref<8x8x32xf32, #tpu.memory_space<vmem>>, vector<8x8x32xf32>
    %c0_3 = arith.constant 0 : index
    %c0_4 = arith.constant 0 : index
    %4 = vector.load %arg3[%c0_3, %c0_4] : memref<8x8xf32, #tpu.memory_space<vmem>>, vector<8x8xf32>
    %c0_5 = arith.constant 0 : index
    %c0_6 = arith.constant 0 : index
    %5 = vector.load %arg4[%c0_5, %c0_6] : memref<1x32xf32, #tpu.memory_space<vmem>>, vector<1x32xf32>
    %6 = vector.shape_cast %5 : vector<1x32xf32> to vector<1x1x32xf32>
    %7 = vector.broadcast %6 : vector<1x1x32xf32> to vector<8x8x32xf32>
    %8 = arith.mulf %3, %7 : vector<8x8x32xf32>
    %cst = arith.constant dense<0.000000e+00> : vector<8x8xf32>
    %9 = vector.multi_reduction <add>, %8, %cst [2] : vector<8x8x32xf32> to vector<8x8xf32>
    %cst_7 = arith.constant 0.000000e+00 : f32
    %10 = vector.broadcast %cst_7 : f32 to vector<8x8xf32>
    %11 = arith.cmpf one, %4, %10 : vector<8x8xf32>
    %cst_8 = arith.constant 0xFF800000 : f32
    %12 = vector.broadcast %cst_8 : f32 to vector<8x8xf32>
    %13 = arith.select %11, %9, %12 : vector<8x8xi1>, vector<8x8xf32>
    %c0_9 = arith.constant 0 : index
    %c0_10 = arith.constant 0 : index
    %14 = vector.load %arg10[%c0_9, %c0_10] : memref<8x1xf32, #tpu.memory_space<vmem>>, vector<8x1xf32>
    %cst_11 = arith.constant dense<0xFF800000> : vector<8xf32>
    %15 = vector.multi_reduction <maximumf>, %13, %cst_11 [1] : vector<8x8xf32> to vector<8xf32>
    %16 = vector.shape_cast %15 : vector<8xf32> to vector<8x1xf32>
    %17 = arith.maximumf %14, %16 : vector<8x1xf32>
    %cst_12 = arith.constant -3.40282347E+38 : f32
    %18 = vector.broadcast %cst_12 : f32 to vector<8x1xf32>
    %19 = arith.maximumf %17, %18 : vector<8x1xf32>
    %20 = arith.subf %14, %19 : vector<8x1xf32>
    %21 = math.exp %20 : vector<8x1xf32>
    %22 = vector.broadcast %19 : vector<8x1xf32> to vector<8x8xf32>
    %23 = arith.subf %13, %22 : vector<8x8xf32>
    %24 = math.exp %23 : vector<8x8xf32>
    %c0_13 = arith.constant 0 : index
    %c0_14 = arith.constant 0 : index
    %25 = vector.load %arg11[%c0_13, %c0_14] : memref<8x1xf32, #tpu.memory_space<vmem>>, vector<8x1xf32>
    %26 = arith.mulf %21, %25 : vector<8x1xf32>
    %cst_15 = arith.constant dense<0.000000e+00> : vector<8xf32>
    %27 = vector.multi_reduction <add>, %24, %cst_15 [1] : vector<8x8xf32> to vector<8xf32>
    %28 = vector.shape_cast %27 : vector<8xf32> to vector<8x1xf32>
    %29 = arith.addf %26, %28 : vector<8x1xf32>
    %c0_16 = arith.constant 0 : index
    %c0_17 = arith.constant 0 : index
    %30 = vector.load %arg11[%c0_16, %c0_17] : memref<8x1xf32, #tpu.memory_space<vmem>>, vector<8x1xf32>
    tpu.vector_store %arg11[%c0_16, %c0_17], %29 {strides = array<i32>} : memref<8x1xf32, #tpu.memory_space<vmem>>, vector<8x1xf32>,
    %c0_18 = arith.constant 0 : index
    %c0_19 = arith.constant 0 : index
    %31 = vector.load %arg12[%c0_18, %c0_19] : memref<8x32xf32, #tpu.memory_space<vmem>>, vector<8x32xf32>
    %32 = vector.broadcast %21 : vector<8x1xf32> to vector<8x32xf32>
    %33 = arith.mulf %32, %31 : vector<8x32xf32>
    %34 = vector.shape_cast %24 : vector<8x8xf32> to vector<8x8x1xf32>
    %35 = vector.broadcast %34 : vector<8x8x1xf32> to vector<8x8x32xf32>
    %36 = arith.mulf %35, %3 : vector<8x8x32xf32>
    %cst_20 = arith.constant dense<0.000000e+00> : vector<8x32xf32>
    %37 = vector.multi_reduction <add>, %36, %cst_20 [1] : vector<8x8x32xf32> to vector<8x32xf32>
    %38 = arith.addf %33, %37 : vector<8x32xf32>
    %c0_21 = arith.constant 0 : index
    %c0_22 = arith.constant 0 : index
    %39 = vector.load %arg12[%c0_21, %c0_22] : memref<8x32xf32, #tpu.memory_space<vmem>>, vector<8x32xf32>
    tpu.vector_store %arg12[%c0_21, %c0_22], %38 {strides = array<i32>} : memref<8x32xf32, #tpu.memory_space<vmem>>, vector<8x32xf32>,
    %c0_23 = arith.constant 0 : index
    %c0_24 = arith.constant 0 : index
    %40 = vector.load %arg10[%c0_23, %c0_24] : memref<8x1xf32, #tpu.memory_space<vmem>>, vector<8x1xf32>
    tpu.vector_store %arg10[%c0_23, %c0_24], %17 {strides = array<i32>} : memref<8x1xf32, #tpu.memory_space<vmem>>, vector<8x1xf32>,
    %c0_i32_25 = arith.constant 0 : i32
    %41 = arith.cmpi eq, %arg1, %c0_i32_25 : i32
    %42 = arith.extui %41 : i1 to i32
    %c0_i32_26 = arith.constant 0 : i32
    %43 = arith.cmpi ne, %42, %c0_i32_26 : i32
    scf.if %43 {
      %c0_27 = arith.constant 0 : index
      %c0_28 = arith.constant 0 : index
      %44 = vector.load %arg12[%c0_27, %c0_28] : memref<8x32xf32, #tpu.memory_space<vmem>>, vector<8x32xf32>
      %c0_29 = arith.constant 0 : index
      %c0_30 = arith.constant 0 : index
      %45 = vector.load %arg11[%c0_29, %c0_30] : memref<8x1xf32, #tpu.memory_space<vmem>>, vector<8x1xf32>
      %46 = tpu.reciprocal %45 : vector<8x1xf32> -> vector<8x1xf32>
      %47 = vector.broadcast %46 : vector<8x1xf32> to vector<8x32xf32>
      %48 = arith.mulf %44, %47 : vector<8x32xf32>
      %c0_31 = arith.constant 0 : index
      %c0_32 = arith.constant 0 : index
      %49 = vector.load %arg5[%c0_31, %c0_32] : memref<32x32xf32, #tpu.memory_space<vmem>>, vector<32x32xf32>
      %cst_33 = arith.constant dense<0.000000e+00> : vector<8x32xf32>
      %50 = tpu.matmul %48, %49, %cst_33 {dimension_numbers = #tpu.dot_dimension_numbers<[1], [0], [0], [1], [0, 0, 1, 1], [], []>} : vector<8x32xf32>, vector<32x32xf32>, vector<8x32xf32> -> vector<8x32xf32>
      %c0_34 = arith.constant 0 : index
      %c0_35 = arith.constant 0 : index
      %51 = vector.load %arg6[%c0_34, %c0_35] : memref<1x32xf32, #tpu.memory_space<vmem>>, vector<1x32xf32>
      %52 = vector.broadcast %51 : vector<1x32xf32> to vector<8x32xf32>
      %53 = arith.addf %50, %52 : vector<8x32xf32>
      %cst_36 = arith.constant 0.000000e+00 : f32
      %54 = vector.broadcast %cst_36 : f32 to vector<8x32xf32>
      %55 = arith.maximumf %53, %54 : vector<8x32xf32>
      %c0_37 = arith.constant 0 : index
      %c0_38 = arith.constant 0 : index
      %56 = vector.load %arg7[%c0_37, %c0_38] : memref<32x128xf32, #tpu.memory_space<vmem>>, vector<32x128xf32>
      %cst_39 = arith.constant dense<0.000000e+00> : vector<8x128xf32>
      %57 = tpu.matmul %55, %56, %cst_39 {dimension_numbers = #tpu.dot_dimension_numbers<[1], [0], [0], [1], [0, 0, 1, 1], [], []>} : vector<8x32xf32>, vector<32x128xf32>, vector<8x128xf32> -> vector<8x128xf32>
      %c0_40 = arith.constant 0 : index
      %c0_41 = arith.constant 0 : index
      %58 = vector.load %arg8[%c0_40, %c0_41] : memref<1x128xf32, #tpu.memory_space<vmem>>, vector<1x128xf32>
      %59 = vector.broadcast %58 : vector<1x128xf32> to vector<8x128xf32>
      %60 = arith.addf %57, %59 : vector<8x128xf32>
      %c0_42 = arith.constant 0 : index
      %c0_43 = arith.constant 0 : index
      %61 = vector.load %arg9[%c0_42, %c0_43] : memref<8x128xf32, #tpu.memory_space<vmem>>, vector<8x128xf32>
      tpu.vector_store %arg9[%c0_42, %c0_43], %60 {strides = array<i32>} : memref<8x128xf32, #tpu.memory_space<vmem>>, vector<8x128xf32>,
    } else {
    }
    return
  }
  func.func @transform_0(%arg0: i32, %arg1: i32) -> (i32, i32, i32) {
    %c0_i32 = arith.constant 0 : i32
    %c0_i32_0 = arith.constant 0 : i32
    return %arg0, %arg1, %c0_i32 : i32, i32, i32
  }
  func.func @transform_1(%arg0: i32, %arg1: i32) -> (i32, i32) {
    %c0_i32 = arith.constant 0 : i32
    return %arg0, %arg1 : i32, i32
  }
  func.func @transform_2(%arg0: i32, %arg1: i32) -> (i32, i32) {
    %c0_i32 = arith.constant 0 : i32
    %c0_i32_0 = arith.constant 0 : i32
    %c0_i32_1 = arith.constant 0 : i32
    return %c0_i32, %c0_i32_0 : i32, i32
  }
  func.func @transform_3(%arg0: i32, %arg1: i32) -> (i32, i32) {
    %c0_i32 = arith.constant 0 : i32
    %c0_i32_0 = arith.constant 0 : i32
    %c0_i32_1 = arith.constant 0 : i32
    return %c0_i32, %c0_i32_0 : i32, i32
  }
  func.func @transform_4(%arg0: i32, %arg1: i32) -> (i32, i32) {
    %c0_i32 = arith.constant 0 : i32
    %c0_i32_0 = arith.constant 0 : i32
    %c0_i32_1 = arith.constant 0 : i32
    return %c0_i32, %c0_i32_0 : i32, i32
  }
  func.func @transform_5(%arg0: i32, %arg1: i32) -> (i32, i32) {
    %c0_i32 = arith.constant 0 : i32
    %c0_i32_0 = arith.constant 0 : i32
    %c0_i32_1 = arith.constant 0 : i32
    return %c0_i32, %c0_i32_0 : i32, i32
  }
  func.func @transform_6(%arg0: i32, %arg1: i32) -> (i32, i32) {
    %c0_i32 = arith.constant 0 : i32
    %c0_i32_0 = arith.constant 0 : i32
    %c0_i32_1 = arith.constant 0 : i32
    return %c0_i32, %c0_i32_0 : i32, i32
  }
  func.func @transform_7(%arg0: i32, %arg1: i32) -> (i32, i32) {
    %c0_i32 = arith.constant 0 : i32
    %c0_i32_0 = arith.constant 0 : i32
    return %arg0, %c0_i32 : i32, i32
  }
}

</mosaic_0001>

<bundles_post_ra>
// kernel: tpu_custom_call.1
= control target key start
LH: loop header
LB: loop body
LE: loop exit
PB: predicated region body
PF: predicated region fallthrough
CT: control target
= control target key end

     0   :  { %12 = vsyncpa [#allocation6], 0  ;;  %s760_s0 = inlined_call_operand.hbm [shape: f32[8,8,32], index: 0, kind: input, shape index: {}]   ;;  %s761_s1 = inlined_call_operand.hbm [shape: f32[8,8], index: 1, kind: input, shape index: {}]   ;;  %s762_s2 = inlined_call_operand.vmem [shape: f32[1,32], index: 2, kind: input, shape index: {}]   ;;  %s763_s3 = inlined_call_operand.hbm [shape: f32[32,32], index: 3, kind: input, shape index: {}]   ;;  %s764_s4 = inlined_call_operand.vmem [shape: f32[1,32], index: 4, kind: input, shape index: {}]   ;;  %s765_s5 = inlined_call_operand.hbm [shape: f32[32,128], index: 5, kind: input, shape index: {}]   ;;  %s766_s6 = inlined_call_operand.vmem [shape: f32[1,128], index: 6, kind: input, shape index: {}]   ;;  %s767_s7 = inlined_call_operand.hbm [shape: f32[8,128], index: 7, kind: output, shape index: {}]  }
   0x1   :  { %13 = vsyncpa [#allocation9], 0 }
   0x2   :  { %14 = vsyncpa [#allocation12], 0  ;;  %s34_s26 = sshll.u32 %s761_s1, 4  ;;  %s35_s26 = int_to_ptr.hbm [resolvable:$true] %s34_s26 }
   0x3   :  { %15 = vsyncpa [#allocation7], 0  ;;  %s614_s27 = smov [#allocation8]   ;;  %s20_s8 = sshll.u32 %s760_s0, 4  ;;  %s21_s8 = int_to_ptr.hbm [resolvable:$true] %s20_s8 }
   0x4   :  { %s36_s28 = sshll.u32 %s614_s27, 4  ;;  %s615_s9 = smov [#allocation5]   ;;  %s37_s28 = int_to_ptr.vmem [resolvable:$true] %s36_s28 }
   0x5   :  { %39 = dma.hbm_to_vmem [thread:$0]  %s35_s26, 128, %s37_s28, [#allocation9]  }
   0x6   :  { %s22_s10 = sshll.u32 %s615_s9, 4  ;;  %s616_s11 = smov 128   ;;  %s23_s10 = int_to_ptr.vmem [resolvable:$true] %s22_s10 }
   0x7   :  { %s617_s12 = smov 8   ;;  %s46_s1 = sshll.u32 %s763_s3, 4  ;;  %s47_s1 = int_to_ptr.hbm [resolvable:$true] %s46_s1 }
   0x8   :  { %28 = dma.hbm_to_vmem [thread:$0]  %s21_s8, 1024, %s23_s10, [#allocation6], %s616_s11, %s616_s11, %s617_s12  }
   0x9   :  { %s618_s15 = smov [#allocation10]   ;;  %s61_s0 = sshll.u32 %s765_s5, 4  ;;  %s62_s0 = int_to_ptr.hbm [resolvable:$true] %s61_s0 }
   0xa   :  { %s48_s16 = sshll.u32 %s618_s15, 4  ;;  %s619_s19 = smov [#allocation11]   ;;  %s49_s16 = int_to_ptr.vmem [resolvable:$true] %s48_s16 }
   0xb   :  { %54 = dma.hbm_to_vmem [thread:$0]  %s47_s1, 512, %s49_s16, [#allocation9], %s616_s11, %s616_s11, %s617_s12  }
   0xc   :  { %s63_s20 = sshll.u32 %s619_s19, 4  ;;  %s64_s20 = int_to_ptr.vmem [resolvable:$true] %s63_s20 }
   0xd   :  { %69 = dma.hbm_to_vmem [thread:$0]  %s62_s0, 512, %s64_s20, [#allocation12], %s616_s11, %s616_s11, %s617_s12  }
   0xe   :  { %606 = dma.done.wait [#allocation6], 1024  }
   0xf   :  { %607 = vsyncadd [#allocation6], 4294966272 }
  0x10   :  { %608 = dma.done.wait [#allocation9], 640  }
  0x11   :  { %609 = vsyncadd [#allocation9], 4294966656 }
  0x12   :  { %610 = dma.done.wait [#allocation12], 512  }
  0x13   :  { %611 = vsyncadd [#allocation12], 4294966784  ;;  %v676_v0 = vld [vmem:[#allocation5] sm:$0xff]  ;;  %v477_v1 = vld [vmem:[%s762_s2] ss:$0 sm:$0xff]  ;;  %vm95_vm0 = vcmask 261120   ;;  %v152_v28 = vlaneseq }
  0x14   :  { %v681_v2 = vld [vmem:[#allocation5 + $0x10] sm:$0xff]  ;;  %v683_v3 = vld [vmem:[#allocation5 + $0x20] sm:$0xff]  ;;  %v110_v4 = vmul.f32 %v477_v1, %v676_v0  ;;  %v688_v7 = vld [vmem:[#allocation5 + $0x8] sm:$0xff]  ;;  %vm92_vm1 = vcmask 7168   ;;  %v620_v25 = vmov -inf   ;;  %vm162_vm2 = vcmask 1041409  }
  0x15   :  { %v112_v5 = vmul.f32 %v477_v1, %v681_v2  ;;  %v114_v6 = vmul.f32 %v477_v1, %v683_v3  ;;  %v690_v8 = vld [vmem:[#allocation5 + $0x18] sm:$0xff]  ;;  %v695_v12 = vld [vmem:[#allocation5 + $0x28] sm:$0xff]  ;;  %v111_v13 = vmul.f32 %v477_v1, %v688_v7  ;;  %v703_v19 = vld [vmem:[#allocation5 + $0x30] sm:$0xff]  ;;  %93 = vst.msk [vmem:[#allocation2] sm:$0xff] %vm92_vm1, %v620_v25  ;;  %v153_v30 = vand.u32 127, %v152_v28  ;;  %s623_s24 = smov [#allocation13]  }
  0x16   :  { %v119_v9 = vsel %vm95_vm0, %v110_v4, 0.0  ;;  %v113_v14 = vmul.f32 %v477_v1, %v690_v8  ;;  %v115_v15 = vmul.f32 %v477_v1, %v695_v12  ;;  %v705_v20 = vld [vmem:[#allocation5 + $0x38] sm:$0xff]  ;;  %v116_v21 = vmul.f32 %v477_v1, %v703_v19  ;;  %v105_v44 = vld [vmem:[#allocation8] sm:$0xff]  ;;  %s444_s25 = sshll.u32 %s623_s24, 4  ;;  %s446_s28 = sshll.u32 %s767_s7, 4  ;;  %s445_s25 = int_to_ptr.vmem [resolvable:$true] %s444_s25  ;;  %s447_s28 = int_to_ptr.hbm [resolvable:$true] %s446_s28 }
  0x17   :  { %v125_v10 = vsel %vm95_vm0, %v112_v5, 0.0  ;;  %v131_v11 = vsel %vm95_vm0, %v114_v6, 0.0  ;;  %120 = vadd.xlane.f32.xlu0 %v119_v9  ;;  %v122_v16 = vsel %vm95_vm0, %v111_v13, 0.0  ;;  %v117_v22 = vmul.f32 %v477_v1, %v705_v20 }
  0x18   :  { %126 = vadd.xlane.f32.xlu1 %v125_v10  ;;  %132 = vadd.xlane.f32.xlu2 %v131_v11  ;;  %v128_v17 = vsel %vm95_vm0, %v113_v14, 0.0  ;;  %v134_v18 = vsel %vm95_vm0, %v115_v15, 0.0  ;;  %v137_v23 = vsel %vm95_vm0, %v116_v21, 0.0  ;;  %vm164_vm3 = vcmask 1042434  }
  0x19   :  { %v140_v24 = vsel %vm95_vm0, %v117_v22, 0.0  ;;  %vm166_vm4 = vcmask 1043459   ;;  %vm168_vm5 = vcmask 1044484   ;;  %vm170_vm6 = vcmask 1045509  }
  0x1a   :  { %vm172_vm7 = vcmask 1046534   ;;  %vm174_vm8 = vcmask 1047559   ;;  %vm143_vm9 = vcmp.ne.f32.partialorder %v105_v44, 0.0  ;;  %vm179_vm10 = vcmask 64512  }
  0x1b   :  { %v621_v54 = vmov 0   ;;  %v622_v55 = vmov 0.0   ;;  %v213_v61 = vshrl.u32 %v152_v28, 7 }
  0x1c   :  { %470 = vset.pattern.permute.xlu0 %v621_v54  ;;  %94 = vst.msk [vmem:[#allocation3] sm:$0xff] %vm92_vm1, %v622_v55  ;;  %v178_v56 = vld [vmem:[#allocation2] sm:$0xff] }
  0x1d   :  { %96 = vst.msk [vmem:[#allocation4] sm:$0xff] %vm95_vm0, %v622_v55  ;;  %471 = vset.pattern.permute.xlu2 %v213_v61  ;;  %472 = vset.pattern.permute.xlu1 %v213_v61 }
  0x1f   :  { %123 = vadd.xlane.f32.xlu0 %v122_v16 }
  0x20   :  { %129 = vadd.xlane.f32.xlu1 %v128_v17  ;;  %135 = vadd.xlane.f32.xlu2 %v134_v18 }
  0x23   :  { %v196_v22 = vld [vmem:[#allocation3] sm:$0xff] }
  0x27   :  { %138 = vadd.xlane.f32.xlu0 %v137_v23 }
  0x28   :  { %141 = vadd.xlane.f32.xlu1 %v140_v24 }
  0x8a   :  { %v121_v26 = vpop.xlane.xlu0 %120 }
  0x8b   :  { %v127_v27 = vpop.xlane.xlu1 %126  ;;  %v133_v29 = vpop.xlane.xlu2 %132  ;;  %v154_v33 = vperm.slane %v121_v26, %v153_v30 }
  0x8c   :  { %v156_v36 = vperm.slane %v127_v27, %v153_v30  ;;  %v158_v40 = vperm.slane %v133_v29, %v153_v30 }
  0x92   :  { %v124_v31 = vpop.xlane.xlu0 %123 }
  0x93   :  { %v130_v32 = vpop.xlane.xlu1 %129  ;;  %v155_v34 = vperm.slane %v124_v31, %v153_v30  ;;  %v136_v38 = vpop.xlane.xlu2 %135 }
  0x94   :  { %v157_v35 = vperm.slane %v130_v32, %v153_v30  ;;  %v159_v42 = vperm.slane %v136_v38, %v153_v30 }
  0x95   :  { %v163_v37 = vsel %vm162_vm2, %v155_v34, %v154_v33 }
  0x96   :  { %v165_v39 = vsel %vm164_vm3, %v156_v36, %v163_v37 }
  0x97   :  { %v167_v41 = vsel %vm166_vm4, %v157_v35, %v165_v39 }
  0x98   :  { %v169_v43 = vsel %vm168_vm5, %v158_v40, %v167_v41 }
  0x99   :  { %v171_v49 = vsel %vm170_vm6, %v159_v42, %v169_v43 }
  0x9a   :  { %v139_v45 = vpop.xlane.xlu0 %138 }
  0x9b   :  { %v142_v46 = vpop.xlane.xlu1 %141  ;;  %v160_v47 = vperm.slane %v139_v45, %v153_v30 }
  0x9c   :  { %v161_v48 = vperm.slane %v142_v46, %v153_v30 }
  0x9d   :  { %v173_v50 = vsel %vm172_vm7, %v160_v47, %v171_v49 }
  0x9e   :  { %v175_v51 = vsel %vm174_vm8, %v161_v48, %v173_v50 }
  0x9f   :  { %v177_v52 = vsel %vm143_vm9, %v175_v51, -inf }
  0xa0   :  { %v180_v53 = vsel %vm179_vm10, %v177_v52, -inf }
  0xa1   :  { %181 = vmax.xlane.f32.xlu2 %v180_v53  ;;  %v378_v53 = vld [vmem:[#allocation10 + $0x18] sm:$0xff] }
  0xa2   :  { %398 = vmatpush.msra.mxu0 %v378_v53 }
 0x114   :  { %v182_v57 = vpop.xlane.xlu2 %181 }
 0x115   :  { %v183_v58 = vmax.f32 %v178_v56, %v182_v57 }
 0x117   :  { %v184_v59 = vmax.f32 %v183_v58, -3.4028235e+38  ;;  %349 = vst.msk [vmem:[#allocation2] sm:$0xff] %vm92_vm1, %v183_v58 }
 0x119   :  { %v185_v60 = vsub.f32 %v178_v56, %v184_v59  ;;  %190 = vperm.xlu0 %470, %v184_v59  }
 0x11b   :  { %v186_v13 = vmul.f32 1.442695, %v185_v60 }
 0x121   :  { %473 = vset.pattern.permute.xlu0 %v213_v61 }
 0x18b   :  { %v191_v62 = vpop.permute.xlu0 %190 }
 0x18c   :  { %v193_v63 = vsub.f32 %v177_v52, %v191_v62 }
 0x18e   :  { %v194_v1 = vmul.f32 1.442695, %v193_v63 }
 0x190   :  { %480 = vpow2.f32 %v194_v1 }
 0x191   :  { %482 = vpow2.f32 %v186_v13 }
 0x196   :  { %v481_v4 = vpop.eup %480 }
 0x197   :  { %v198_v5 = vsel %vm179_vm10, %v481_v4, 0.0  ;;  %v246_v6 = vperm.slane %v481_v4, 5  ;;  %v211_v9 = vperm.slane %v481_v4, 0  ;;  %v225_v10 = vperm.slane %v481_v4, 2  ;;  %v483_v17 = vpop.eup %482 }
 0x198   :  { %199 = vadd.xlane.f32.xlu1 %v198_v5  ;;  %v232_v11 = vperm.slane %v481_v4, 3  ;;  %v253_v14 = vperm.slane %v481_v4, 6  ;;  %v218_v15 = vperm.slane %v481_v4, 1  ;;  %v239_v16 = vperm.slane %v481_v4, 4 }
 0x199   :  { %251 = vperm.xlu0 %473, %v246_v6   ;;  %216 = vperm.xlu2 %471, %v211_v9   ;;  %v260_v18 = vperm.slane %v481_v4, 7  ;;  %v197_v23 = vmul.f32 %v483_v17, %v196_v22 }
 0x1a1   :  { %230 = vperm.xlu2 %471, %v225_v10   ;;  %476 = vset.pattern.permute.xlu0 %v621_v54 }
 0x1a9   :  { %237 = vperm.xlu2 %471, %v232_v11  }
 0x1b1   :  { %258 = vperm.xlu2 %471, %v253_v14   ;;  %223 = vperm.xlu1 %472, %v218_v15  }
 0x1b9   :  { %474 = vset.pattern.permute.xlu2 %v621_v54  ;;  %244 = vperm.xlu1 %472, %v239_v16  }
 0x1ba   :  { %207 = vperm.xlu2 %474, %v483_v17  }
 0x1c1   :  { %265 = vperm.xlu1 %472, %v260_v18  }
 0x1c9   :  { %475 = vset.pattern.permute.xlu1 %v621_v54  ;;  %v377_v54 = vld [vmem:[#allocation10 + $0x10] sm:$0xff] }
 0x1ca   :  { %399 = vmatpush.msra.mxu0 %v377_v54  ;;  %v375_v54 = vld [vmem:[#allocation10] sm:$0xff] }
 0x1f3   :  { %v217_v21 = vpop.permute.xlu2 %216 }
 0x1f4   :  { %v267_v28 = vmul.f32 %v217_v21, %v676_v0 }
 0x1f6   :  { %v275_v31 = vsel %vm95_vm0, %v267_v28, 0.0 }
 0x1f7   :  { %v276_v36 = vrot.slane %v275_v31, 4 }
 0x1f9   :  { %v277_v44 = vadd.f32 %v276_v36, %v275_v31 }
 0x1fb   :  { %v231_v26 = vpop.permute.xlu2 %230  ;;  %v278_v55 = vrot.slane %v277_v44, 2 }
 0x1fc   :  { %v269_v30 = vmul.f32 %v231_v26, %v681_v2 }
 0x1fd   :  { %v279_v62 = vadd.f32 %v278_v55, %v277_v44  ;;  %v410_v55 = vld [vmem:[#allocation11 + $0x18] sm:$0xff] }
 0x1fe   :  { %v289_v34 = vsel %vm95_vm0, %v269_v30, 0.0  ;;  %430 = vmatpush.msra.mxu1 %v410_v55 }
 0x1ff   :  { %v290_v39 = vrot.slane %v289_v34, 4  ;;  %v280_v14 = vrot.slane %v279_v62, 1 }
 0x201   :  { %v291_v47 = vadd.f32 %v290_v39, %v289_v34 }
 0x203   :  { %v238_v29 = vpop.permute.xlu2 %237  ;;  %v292_v61 = vrot.slane %v291_v47, 2 }
 0x204   :  { %v270_v33 = vmul.f32 %v238_v29, %v690_v8 }
 0x205   :  { %v293_v11 = vadd.f32 %v292_v61, %v291_v47 }
 0x206   :  { %v296_v40 = vsel %vm95_vm0, %v270_v33, 0.0 }
 0x207   :  { %v297_v48 = vrot.slane %v296_v40, 4 }
 0x209   :  { %v298_v58 = vadd.f32 %v297_v48, %v296_v40 }
 0x20b   :  { %v200_v24 = vpop.xlane.xlu1 %199  ;;  %v252_v37 = vpop.permute.xlu0 %251  ;;  %v299_v6 = vrot.slane %v298_v58, 2 }
 0x20c   :  { %v201_v25 = vadd.f32 %v200_v24, %v197_v23  ;;  %v272_v0 = vmul.f32 %v252_v37, %v695_v12  ;;  %v259_v42 = vpop.permute.xlu2 %258  ;;  %v294_v24 = vrot.slane %v293_v11, 1 }
 0x20d   :  { %v273_v49 = vmul.f32 %v259_v42, %v703_v19  ;;  %v300_v18 = vadd.f32 %v299_v6, %v298_v58  ;;  %v409_v58 = vld [vmem:[#allocation11 + $0x10] sm:$0xff] }
 0x20e   :  { %203 = vst.msk [vmem:[#allocation3] sm:$0xff] %vm92_vm1, %v201_v25  ;;  %v310_v51 = vsel %vm95_vm0, %v272_v0, 0.0  ;;  %v281_v25 = vadd.f32 %v280_v14, %v279_v62  ;;  %v295_v33 = vadd.f32 %v294_v24, %v293_v11  ;;  %431 = vmatpush.msra.mxu1 %v409_v58 }
 0x20f   :  { %v311_v59 = vrot.slane %v310_v51, 4  ;;  %v317_v19 = vsel %vm95_vm0, %v273_v49, 0.0  ;;  %v301_v29 = vrot.slane %v300_v18, 1 }
 0x210   :  { %v318_v4 = vrot.slane %v317_v19, 4 }
 0x211   :  { %v312_v9 = vadd.f32 %v311_v59, %v310_v51  ;;  %v302_v39 = vadd.f32 %v301_v29, %v300_v18  ;;  %v408_v59 = vld [vmem:[#allocation11 + $0x8] sm:$0xff] }
 0x212   :  { %v319_v17 = vadd.f32 %v318_v4, %v317_v19  ;;  %432 = vmatpush.msra.mxu1 %v408_v59  ;;  %v407_v19 = vld [vmem:[#allocation11] sm:$0xff] }
 0x213   :  { %v313_v21 = vrot.slane %v312_v9, 2 }
 0x214   :  { %v320_v28 = vrot.slane %v319_v17, 2  ;;  %433 = vmatpush.msra.mxu1 %v407_v19 }
 0x215   :  { %v354_v27 = vld [vmem:[#allocation3] sm:$0xff]  ;;  %v314_v30 = vadd.f32 %v313_v21, %v312_v9 }
 0x216   :  { %484 = vrcp.f32 %v354_v27  ;;  %v366_v41 = vand.u32 2147483648, %v354_v27  ;;  %v364_v2 = vand.u32 2147483647, %v354_v27  ;;  %vm360_vm12 = vweird.f32 %v354_v27 }
 0x217   :  { %v321_v37 = vadd.f32 %v320_v28, %v319_v17  ;;  %v315_v40 = vrot.slane %v314_v30, 1 }
 0x218   :  { %v367_v50 = vor.u32 1.1754944e-38, %v366_v41  ;;  %vm365_vm14 = vcmp.eq.f32.partialorder %v364_v2, 8.507059e+37 }
 0x219   :  { %v316_v44 = vadd.f32 %v315_v40, %v314_v30 }
 0x21c   :  { %v485_v32 = vpop.eup %484 }
 0x21d   :  { %v356_v35 = vmul.f32 %v485_v32, %v354_v27  ;;  %vm361_vm11 = vweird.f32 %v485_v32 }
 0x21e   :  { %vm362_vm13 = vmor %vm360_vm12, %vm361_vm11 }
 0x21f   :  { %v357_v38 = vsub.f32 1.0, %v356_v35 }
 0x221   :  { %v358_v43 = vmul.f32 %v485_v32, %v357_v38 }
 0x223   :  { %v224_v45 = vpop.permute.xlu1 %223  ;;  %v359_v46 = vadd.f32 %v485_v32, %v358_v43  ;;  %v322_v43 = vrot.slane %v321_v37, 1 }
 0x224   :  { %v268_v8 = vmul.f32 %v224_v45, %v688_v7  ;;  %v376_v7 = vld [vmem:[#allocation10 + $0x8] sm:$0xff] }
 0x225   :  { %v363_v52 = vsel %vm362_vm13, %v485_v32, %v359_v46  ;;  %400 = vmatpush.msra.mxu0 %v376_v7  ;;  %v208_v46 = vpop.permute.xlu2 %207  ;;  %v323_v49 = vadd.f32 %v322_v43, %v321_v37 }
 0x226   :  { %v282_v12 = vsel %vm95_vm0, %v268_v8, 0.0  ;;  %v368_v57 = vsel %vm365_vm14, %v367_v50, %v363_v52  ;;  %v204_v8 = vld [vmem:[#allocation4] sm:$0xff] }
 0x227   :  { %v283_v56 = vrot.slane %v282_v12, 4  ;;  %371 = vperm.xlu1 %475, %v368_v57   ;;  %v210_v51 = vmul.f32 %v208_v46, %v204_v8  ;;  %401 = vmatpush.msra.mxu0 %v375_v54 }
 0x229   :  { %v284_v60 = vadd.f32 %v283_v56, %v282_v12 }
 0x22b   :  { %v285_v63 = vrot.slane %v284_v60, 2  ;;  %v245_v1 = vpop.permute.xlu1 %244 }
 0x22c   :  { %v271_v5 = vmul.f32 %v245_v1, %v683_v3  ;;  %v479_v1 = vld [vmem:[%s766_s6] ss:$0 sm:$0xff] }
 0x22d   :  { %v286_v10 = vadd.f32 %v285_v63, %v284_v60  ;;  %v478_v60 = vld [vmem:[%s764_s4] ss:$0 sm:$0xff] }
 0x22e   :  { %v303_v13 = vsel %vm95_vm0, %v271_v5, 0.0 }
 0x22f   :  { %v287_v15 = vrot.slane %v286_v10, 1  ;;  %v304_v16 = vrot.slane %v303_v13, 4 }
 0x231   :  { %v288_v22 = vadd.f32 %v287_v15, %v286_v10  ;;  %v305_v23 = vadd.f32 %v304_v16, %v303_v13 }
 0x233   :  { %v306_v26 = vrot.slane %v305_v23, 2  ;;  %v266_v27 = vpop.permute.xlu1 %265  ;;  %v339_v31 = vsel %vm162_vm2, %v288_v22, %v281_v25 }
 0x234   :  { %v274_v3 = vmul.f32 %v266_v27, %v705_v20  ;;  %v340_v38 = vsel %vm164_vm3, %v295_v33, %v339_v31 }
 0x235   :  { %v307_v32 = vadd.f32 %v306_v26, %v305_v23  ;;  %v341_v42 = vsel %vm166_vm4, %v302_v39, %v340_v38 }
 0x236   :  { %v324_v34 = vsel %vm95_vm0, %v274_v3, 0.0 }
 0x237   :  { %v308_v35 = vrot.slane %v307_v32, 1  ;;  %v325_v36 = vrot.slane %v324_v34, 4 }
 0x239   :  { %v309_v41 = vadd.f32 %v308_v35, %v307_v32  ;;  %v326_v0 = vadd.f32 %v325_v36, %v324_v34 }
 0x23b   :  { %v327_v20 = vrot.slane %v326_v0, 2  ;;  %v342_v2 = vsel %vm168_vm5, %v309_v41, %v341_v42 }
 0x23c   :  { %v343_v47 = vsel %vm170_vm6, %v316_v44, %v342_v2 }
 0x23d   :  { %v328_v45 = vadd.f32 %v327_v20, %v326_v0  ;;  %v344_v12 = vsel %vm172_vm7, %v323_v49, %v343_v47 }
 0x23f   :  { %v329_v48 = vrot.slane %v328_v45, 1 }
 0x241   :  { %v330_v50 = vadd.f32 %v329_v48, %v328_v45 }
 0x243   :  { %v345_v52 = vsel %vm174_vm8, %v330_v50, %v344_v12 }
 0x244   :  { %v347_v53 = vadd.f32 %v345_v52, %v210_v51 }
 0x246   :  { %348 = vst.msk [vmem:[#allocation4] sm:$0xff] %vm95_vm0, %v347_v53 }
 0x24d   :  { %v353_v56 = vld [vmem:[#allocation4] sm:$0xff] }
 0x299   :  { %v372_v57 = vpop.permute.xlu1 %371 }
 0x29a   :  { %v374_v7 = vmul.f32 %v372_v57, %v353_v56 }
 0x29c   :  { %458 = vmatmul.msk.f32.vlgmr.msra.gmra.mxu0 %vm95_vm0, %v374_v7 }
 0x319   :  { %v403_v61 = vpop.f32.mrf.mxu0 }
 0x31a   :  { %v404_v62 = vadd.f32 %v478_v60, %v403_v61 }
 0x31c   :  { %v406_v63 = vmax.f32 %v404_v62, 0.0 }
 0x31e   :  { %459 = vmatmul.msk.f32.vlgmr.msra.gmra.mxu1 %vm95_vm0, %v406_v63 }
 0x39b   :  { %v435_v4 = vpop.f32.mrf.mxu1 }
 0x39c   :  { %v436_v5 = vadd.f32 %v479_v1, %v435_v4 }
 0x39e   :  { %438 = vst [vmem:[#allocation13] sm:$0xff] %v436_v5 }
 0x39f   :  { %449 = dma.vmem_to_hbm [thread:$0]  %s445_s25, 128, %s447_s28, [#allocation7]  }
 0x3a0   :  { %612 = dma.done.wait [#allocation7], 128  }
 0x3a1   :  { %613 = vsyncadd [#allocation7], 4294967168 }
 0x3a2   :  { %454 = vsyncpa [#allocation6], 1 }
 0x3a3   :  { %455 = vsyncpa [#allocation9], 1 }
 0x3a4   :  { %456 = vsyncpa [#allocation12], 1 }
 0x3a5   :  { %457 = vsyncpa [#allocation7], 1 }

</bundles_post_ra>
